<compile_context>
chip_gen: v5e
topology: v5e:2x2
jax: 0.10.0
libtpu: 0.0.40
codegen_flags: <defaults>
</compile_context>

<pallas_src>
import jax
import jax.numpy as jnp
from jax.experimental import pallas as pl
from jax.experimental.pallas import tpu as pltpu


def _round_up(x, m):
    return ((x + m - 1) // m) * m


def _largest_dividing_tile(total, tile_max):
    """Largest multiple of 128 <= tile_max that divides `total` exactly."""
    start = max(128, tile_max - tile_max % 128)
    for cand in range(start, 127, -128):
        if total % cand == 0:
            return cand
    return 128  # only reached if total % 128 != 0 (caller guarantees otherwise)


def _cls_kernel(x_ref, w_ref, b_ref, o_ref, acc_ref):
    # x_ref: (TB, TK)   w_ref: (K, N) VMEM-resident   b_ref: (1, N) f32
    # o_ref: (TB, N)    acc_ref: (TB, N) f32
    k = pl.program_id(1)
    tk = x_ref.shape[1]

    @pl.when(k == 0)
    def _():
        acc_ref[...] = jnp.zeros_like(acc_ref)

    off = pl.multiple_of(k * tk, tk)
    acc_ref[...] += jnp.dot(x_ref[...], w_ref[pl.ds(off, tk), :],
                            preferred_element_type=jnp.float32)

    @pl.when(k == pl.num_programs(1) - 1)
    def _():
        o_ref[...] = (acc_ref[...] + b_ref[...]).astype(o_ref.dtype)


def classification_layer(x, weight, bias, *, tb_max=512, tk_max=2048):
    """x: (B, C, L); weight: (n_out, C) [PyTorch Linear layout]; bias: (n_out,)."""
    B, C, L = x.shape
    n_out = weight.shape[0]
    K = C * L
    tk_max = max(int(tk_max), 128)
    tb_max = max(int(tb_max), 8)

    # ---- Fuse AdaptiveAvgPool1d(1) into the linear weight (f32 math for 1/L). ----
    # TODO(synk): for inference with static params, precompute w_fused/bias once
    # outside the hot path instead of per call.
    w_fused = (jnp.repeat(weight.T.astype(jnp.float32), L, axis=0)
               * jnp.float32(1.0 / L)).astype(x.dtype)            # (K, n_out)
    b2 = bias.reshape(1, n_out).astype(jnp.float32)

    # ---- K tiling: avoid any HBM round-trip of x whenever possible. ----
    x2 = x.reshape(B, K)                        # contiguous reshape: free
    if K <= tk_max:
        tk_eff, K_eff, w_eff = K, K, w_fused    # single full-K block (full-dim legal)
    elif K % 128 == 0:
        tk_eff = _largest_dividing_tile(K, tk_max)
        K_eff, w_eff = K, w_fused
    else:
        # TODO(synk): mask the ragged last K tile in-kernel instead of padding x.
        K_eff = _round_up(K, 128)
        tk_eff = _largest_dividing_tile(K_eff, tk_max)
        x2 = jnp.pad(x2, ((0, 0), (0, K_eff - K)))
        w_eff = jnp.pad(w_fused, ((0, K_eff - K), (0, 0)))
    nk = K_eff // tk_eff

    # ---- B tiling. ----
    if B <= tb_max:
        # Give v7x's second TensorCore work when the batch splits cleanly.
        tb_eff = B // 2 if (B >= 16 and B % 16 == 0) else B
        B_eff = B
        # TODO(synk): for tiny B on v7x, split K across the 2 cores instead.
    else:
        nb_target = pl.cdiv(B, tb_max)
        tb_eff = _round_up(pl.cdiv(B, nb_target), 8)
        B_eff = _round_up(B, tb_eff)
        if B_eff != B:
            x2 = jnp.pad(x2, ((0, B_eff - B), (0, 0)))
    nb = B_eff // tb_eff

    itemsize = jnp.dtype(x.dtype).itemsize
    cost = pl.CostEstimate(
        flops=2 * B_eff * K_eff * n_out,
        transcendentals=0,
        bytes_accessed=(B_eff * K_eff * itemsize          # x: read once
                        + K_eff * n_out * itemsize        # weight: resident, read once
                        + n_out * 4                       # bias
                        + B_eff * n_out * itemsize),      # output
    )

    out = pl.pallas_call(
        _cls_kernel,
        out_shape=jax.ShapeDtypeStruct((B_eff, n_out), x.dtype),
        grid_spec=pltpu.PrefetchScalarGridSpec(
            num_scalar_prefetch=0,
            grid=(nb, nk),
            in_specs=[
                pl.BlockSpec((tb_eff, tk_eff), lambda i, k: (i, k)),
                pl.BlockSpec((K_eff, n_out), lambda i, k: (0, 0)),   # VMEM-resident weight
                pl.BlockSpec((1, n_out), lambda i, k: (0, 0)),
            ],
            out_specs=pl.BlockSpec((tb_eff, n_out), lambda i, k: (i, 0)),
            scratch_shapes=[pltpu.VMEM((tb_eff, n_out), jnp.float32)],
        ),
        compiler_params=pltpu.CompilerParams(
            dimension_semantics=("parallel", "arbitrary"),
            vmem_limit_bytes=32 * 1024 * 1024,
        ),
        cost_estimate=cost,
    )(x2, w_eff, b2)

    return out[:B] if B_eff != B else out


if __name__ == "__main__":
    key = jax.random.PRNGKey(0)
    kx, kw, kb, kx2, kw2, kb2 = jax.random.split(key, 6)

    def make_case(kx_, kw_, kb_, B, C, L, n_out=2):
        x = jax.random.normal(kx_, (B, C, L), dtype=jnp.float32)
        bound = 1.0 / (C ** 0.5)        # PyTorch-Linear-style uniform init
        w = jax.random.uniform(kw_, (n_out, C), minval=-bound, maxval=bound,
                               dtype=jnp.float32)
        b = jax.random.uniform(kb_, (n_out,), minval=-bound, maxval=bound,
                               dtype=jnp.float32)
        ref = jnp.mean(x, axis=-1) @ w.T + b      # pool -> flatten -> linear
        return x, w, b, ref

    # Case 1: module-spec sized input (B=2, ch_in=32, L=16): single grid step.
    x, w, b, ref = make_case(kx, kw, kb, B=2, C=32, L=16)
    out = jax.block_until_ready(classification_layer(x, w, b))
    assert out.shape == ref.shape
    assert jnp.allclose(out, ref, atol=1e-4, rtol=1e-4)

    # Same input, small K tiles: exercises the multi-step K accumulation and the
    # in-kernel slicing of the VMEM-resident weight.
    out_kt = jax.block_until_ready(classification_layer(x, w, b, tk_max=128))
    assert jnp.allclose(out_kt, ref, atol=1e-4, rtol=1e-4)

    # Case 2: B=32 (splits into 2 "parallel" batch tiles), K=1024 tiled by 256.
    xb, wb, bb, refb = make_case(kx2, kw2, kb2, B=32, C=64, L=16)
    outb = jax.block_until_ready(classification_layer(xb, wb, bb, tk_max=256))
    assert outb.shape == refb.shape
    assert jnp.allclose(outb, refb, atol=1e-4, rtol=1e-4)

    print("KERNEL_OK")
</pallas_src>

<mosaic_0001>
module attributes {stable_mosaic.version = 11 : i64} {
  func.func @_cls_kernel(%arg0: i32, %arg1: i32, %arg2: memref<2x512xf32, #tpu.memory_space<vmem>>, %arg3: memref<512x2xf32, #tpu.memory_space<vmem>>, %arg4: memref<1x2xf32, #tpu.memory_space<vmem>>, %arg5: memref<2x2xf32, #tpu.memory_space<vmem>>, %arg6: memref<2x2xf32, #tpu.memory_space<vmem>>) attributes {dimension_semantics = [#tpu.dimension_semantics<parallel>, #tpu.dimension_semantics<arbitrary>], iteration_bounds = array<i64: 1, 1>, scalar_prefetch = 0 : i64, scratch_operands = 1 : i64, tpu.core_type = #tpu.core_type<tc>, window_params = [{transform_indices = @transform_0, window_bounds = array<i64: 2, 512>}, {pipeline_mode = #tpu.pipeline_mode<synchronous>, transform_indices = @transform_1, window_bounds = array<i64: 512, 2>}, {pipeline_mode = #tpu.pipeline_mode<synchronous>, transform_indices = @transform_2, window_bounds = array<i64: 1, 2>}, {transform_indices = @transform_3, window_bounds = array<i64: 2, 2>}]} {
    %c0_i32 = arith.constant 0 : i32
    %0 = arith.cmpi eq, %arg1, %c0_i32 : i32
    %1 = arith.extui %0 : i1 to i32
    %c0_i32_0 = arith.constant 0 : i32
    %2 = arith.cmpi ne, %1, %c0_i32_0 : i32
    scf.if %2 {
      %cst_9 = arith.constant 0.000000e+00 : f32
      %15 = vector.broadcast %cst_9 : f32 to vector<2x2xf32>
      %c0_10 = arith.constant 0 : index
      %c0_11 = arith.constant 0 : index
      %16 = vector.load %arg6[%c0_10, %c0_11] : memref<2x2xf32, #tpu.memory_space<vmem>>, vector<2x2xf32>
      tpu.vector_store %arg6[%c0_10, %c0_11], %15 {strides = array<i32>} : memref<2x2xf32, #tpu.memory_space<vmem>>, vector<2x2xf32>,
    } else {
    }
    %c512_i32 = arith.constant 512 : i32
    %3 = arith.muli %arg1, %c512_i32 : i32
    %4 = tpu.assume_multiple %3, 512 : i32
    %c0 = arith.constant 0 : index
    %c0_1 = arith.constant 0 : index
    %5 = vector.load %arg6[%c0, %c0_1] : memref<2x2xf32, #tpu.memory_space<vmem>>, vector<2x2xf32>
    %c0_2 = arith.constant 0 : index
    %c0_3 = arith.constant 0 : index
    %6 = vector.load %arg2[%c0_2, %c0_3] : memref<2x512xf32, #tpu.memory_space<vmem>>, vector<2x512xf32>
    %7 = arith.index_cast %4 : i32 to index
    %c0_4 = arith.constant 0 : index
    %8 = vector.load %arg3[%7, %c0_4] : memref<512x2xf32, #tpu.memory_space<vmem>>, vector<512x2xf32>
    %cst = arith.constant dense<0.000000e+00> : vector<2x2xf32>
    %9 = tpu.matmul %6, %8, %cst {dimension_numbers = #tpu.dot_dimension_numbers<[1], [0], [0], [1], [0, 0, 1, 1], [], []>} : vector<2x512xf32>, vector<512x2xf32>, vector<2x2xf32> -> vector<2x2xf32>
    %10 = arith.addf %5, %9 : vector<2x2xf32>
    %c0_5 = arith.constant 0 : index
    %c0_6 = arith.constant 0 : index
    %11 = vector.load %arg6[%c0_5, %c0_6] : memref<2x2xf32, #tpu.memory_space<vmem>>, vector<2x2xf32>
    tpu.vector_store %arg6[%c0_5, %c0_6], %10 {strides = array<i32>} : memref<2x2xf32, #tpu.memory_space<vmem>>, vector<2x2xf32>,
    %c0_i32_7 = arith.constant 0 : i32
    %12 = arith.cmpi eq, %arg1, %c0_i32_7 : i32
    %13 = arith.extui %12 : i1 to i32
    %c0_i32_8 = arith.constant 0 : i32
    %14 = arith.cmpi ne, %13, %c0_i32_8 : i32
    scf.if %14 {
      %c0_9 = arith.constant 0 : index
      %c0_10 = arith.constant 0 : index
      %15 = vector.load %arg6[%c0_9, %c0_10] : memref<2x2xf32, #tpu.memory_space<vmem>>, vector<2x2xf32>
      %c0_11 = arith.constant 0 : index
      %c0_12 = arith.constant 0 : index
      %16 = vector.load %arg4[%c0_11, %c0_12] : memref<1x2xf32, #tpu.memory_space<vmem>>, vector<1x2xf32>
      %17 = vector.broadcast %16 : vector<1x2xf32> to vector<2x2xf32>
      %18 = arith.addf %15, %17 : vector<2x2xf32>
      %c0_13 = arith.constant 0 : index
      %c0_14 = arith.constant 0 : index
      %19 = vector.load %arg5[%c0_13, %c0_14] : memref<2x2xf32, #tpu.memory_space<vmem>>, vector<2x2xf32>
      tpu.vector_store %arg5[%c0_13, %c0_14], %18 {strides = array<i32>} : memref<2x2xf32, #tpu.memory_space<vmem>>, vector<2x2xf32>,
    } else {
    }
    return
  }
  func.func @transform_0(%arg0: i32, %arg1: i32) -> (i32, i32) {
    %c0_i32 = arith.constant 0 : i32
    return %arg0, %arg1 : i32, i32
  }
  func.func @transform_1(%arg0: i32, %arg1: i32) -> (i32, i32) {
    %c0_i32 = arith.constant 0 : i32
    %c0_i32_0 = arith.constant 0 : i32
    %c0_i32_1 = arith.constant 0 : i32
    return %c0_i32, %c0_i32_0 : i32, i32
  }
  func.func @transform_2(%arg0: i32, %arg1: i32) -> (i32, i32) {
    %c0_i32 = arith.constant 0 : i32
    %c0_i32_0 = arith.constant 0 : i32
    %c0_i32_1 = arith.constant 0 : i32
    return %c0_i32, %c0_i32_0 : i32, i32
  }
  func.func @transform_3(%arg0: i32, %arg1: i32) -> (i32, i32) {
    %c0_i32 = arith.constant 0 : i32
    %c0_i32_0 = arith.constant 0 : i32
    return %arg0, %c0_i32 : i32, i32
  }
}

</mosaic_0001>

<bundles_post_ra>
// kernel: tpu_custom_call.1
= control target key start
LH: loop header
LB: loop body
LE: loop exit
PB: predicated region body
PF: predicated region fallthrough
CT: control target
= control target key end

     0   :  { %s463_s0 = inlined_call_operand.vmem [shape: f32[2,512], index: 0, kind: input, shape index: {}]   ;;  %s464_s1 = inlined_call_operand.vmem [shape: f32[512,2], index: 1, kind: input, shape index: {}]   ;;  %s465_s2 = inlined_call_operand.vmem [shape: f32[1,2], index: 2, kind: input, shape index: {}]   ;;  %s466_s3 = inlined_call_operand.hbm [shape: f32[2,2], index: 3, kind: output, shape index: {}]  }
   0x1   :  { %v72_v0 = vld [vmem:[%s464_s1 + $0x178] sm:$0xff]  ;;  %v71_v1 = vld [vmem:[%s464_s1 + $0x170] sm:$0xff]  ;;  %v70_v5 = vld [vmem:[%s464_s1 + $0x168] sm:$0xff] }
   0x2   :  { %v88_v2 = vld [vmem:[%s464_s1 + $0x1f8] sm:$0xff]  ;;  %139 = vmatpush.msra.mxu2 %v72_v0  ;;  %v87_v6 = vld [vmem:[%s464_s1 + $0x1f0] sm:$0xff]  ;;  %v86_v9 = vld [vmem:[%s464_s1 + $0x1e8] sm:$0xff] }
   0x3   :  { %159 = vmatpush.msra.mxu3 %v88_v2  ;;  %v40_v3 = vld [vmem:[%s464_s1 + $0x78] sm:$0xff]  ;;  %v39_v7 = vld [vmem:[%s464_s1 + $0x70] sm:$0xff]  ;;  %v38_v10 = vld [vmem:[%s464_s1 + $0x68] sm:$0xff] }
   0x4   :  { %v56_v4 = vld [vmem:[%s464_s1 + $0xf8] sm:$0xff]  ;;  %99 = vmatpush.msra.mxu0 %v40_v3  ;;  %v55_v8 = vld [vmem:[%s464_s1 + $0xf0] sm:$0xff]  ;;  %140 = vmatpush.msra.mxu2 %v71_v1  ;;  %v69_v11 = vld [vmem:[%s464_s1 + $0x160] sm:$0xff] }
   0x5   :  { %119 = vmatpush.msra.mxu1 %v56_v4  ;;  %160 = vmatpush.msra.mxu3 %v87_v6  ;;  %v54_v12 = vld [vmem:[%s464_s1 + $0xe8] sm:$0xff]  ;;  %v85_v13 = vld [vmem:[%s464_s1 + $0x1e0] sm:$0xff]  ;;  %v68_v16 = vld [vmem:[%s464_s1 + $0x158] sm:$0xff] }
   0x6   :  { %100 = vmatpush.msra.mxu0 %v39_v7  ;;  %141 = vmatpush.msra.mxu2 %v70_v5  ;;  %v37_v14 = vld [vmem:[%s464_s1 + $0x60] sm:$0xff]  ;;  %v84_v17 = vld [vmem:[%s464_s1 + $0x1d8] sm:$0xff]  ;;  %v67_v20 = vld [vmem:[%s464_s1 + $0x150] sm:$0xff] }
   0x7   :  { %120 = vmatpush.msra.mxu1 %v55_v8  ;;  %161 = vmatpush.msra.mxu3 %v86_v9  ;;  %v53_v15 = vld [vmem:[%s464_s1 + $0xe0] sm:$0xff]  ;;  %v36_v18 = vld [vmem:[%s464_s1 + $0x58] sm:$0xff]  ;;  %v83_v21 = vld [vmem:[%s464_s1 + $0x1d0] sm:$0xff] }
   0x8   :  { %101 = vmatpush.msra.mxu0 %v38_v10  ;;  %142 = vmatpush.msra.mxu2 %v69_v11  ;;  %v52_v19 = vld [vmem:[%s464_s1 + $0xd8] sm:$0xff]  ;;  %v35_v22 = vld [vmem:[%s464_s1 + $0x50] sm:$0xff]  ;;  %v66_v24 = vld [vmem:[%s464_s1 + $0x148] sm:$0xff] }
   0x9   :  { %121 = vmatpush.msra.mxu1 %v54_v12  ;;  %162 = vmatpush.msra.mxu3 %v85_v13  ;;  %v51_v23 = vld [vmem:[%s464_s1 + $0xd0] sm:$0xff]  ;;  %v82_v25 = vld [vmem:[%s464_s1 + $0x1c8] sm:$0xff]  ;;  %v65_v28 = vld [vmem:[%s464_s1 + $0x140] sm:$0xff] }
   0xa   :  { %102 = vmatpush.msra.mxu0 %v37_v14  ;;  %143 = vmatpush.msra.mxu2 %v68_v16  ;;  %v34_v26 = vld [vmem:[%s464_s1 + $0x48] sm:$0xff]  ;;  %v81_v29 = vld [vmem:[%s464_s1 + $0x1c0] sm:$0xff]  ;;  %v64_v32 = vld [vmem:[%s464_s1 + $0x138] sm:$0xff] }
   0xb   :  { %122 = vmatpush.msra.mxu1 %v53_v15  ;;  %163 = vmatpush.msra.mxu3 %v84_v17  ;;  %v50_v27 = vld [vmem:[%s464_s1 + $0xc8] sm:$0xff]  ;;  %v33_v30 = vld [vmem:[%s464_s1 + $0x40] sm:$0xff]  ;;  %v80_v33 = vld [vmem:[%s464_s1 + $0x1b8] sm:$0xff] }
   0xc   :  { %103 = vmatpush.msra.mxu0 %v36_v18  ;;  %144 = vmatpush.msra.mxu2 %v67_v20  ;;  %v49_v31 = vld [vmem:[%s464_s1 + $0xc0] sm:$0xff]  ;;  %v32_v34 = vld [vmem:[%s464_s1 + $0x38] sm:$0xff]  ;;  %v63_v36 = vld [vmem:[%s464_s1 + $0x130] sm:$0xff] }
   0xd   :  { %123 = vmatpush.msra.mxu1 %v52_v19  ;;  %164 = vmatpush.msra.mxu3 %v83_v21  ;;  %v48_v35 = vld [vmem:[%s464_s1 + $0xb8] sm:$0xff]  ;;  %v79_v37 = vld [vmem:[%s464_s1 + $0x1b0] sm:$0xff]  ;;  %v62_v40 = vld [vmem:[%s464_s1 + $0x128] sm:$0xff] }
   0xe   :  { %104 = vmatpush.msra.mxu0 %v35_v22  ;;  %145 = vmatpush.msra.mxu2 %v66_v24  ;;  %v31_v38 = vld [vmem:[%s464_s1 + $0x30] sm:$0xff]  ;;  %v78_v41 = vld [vmem:[%s464_s1 + $0x1a8] sm:$0xff]  ;;  %v23_v44 = vld [vmem:[%s463_s0] sm:$0xff] }
   0xf   :  { %124 = vmatpush.msra.mxu1 %v51_v23  ;;  %165 = vmatpush.msra.mxu3 %v82_v25  ;;  %v47_v39 = vld [vmem:[%s464_s1 + $0xb0] sm:$0xff]  ;;  %v30_v42 = vld [vmem:[%s464_s1 + $0x28] sm:$0xff]  ;;  %v61_v45 = vld [vmem:[%s464_s1 + $0x120] sm:$0xff]  ;;  %90 = vst [vmem:[#allocation1] ss:$4 sm:$0xff] %v23_v44 }
  0x10   :  { %105 = vmatpush.msra.mxu0 %v34_v26  ;;  %146 = vmatpush.msra.mxu2 %v65_v28  ;;  %v46_v43 = vld [vmem:[%s464_s1 + $0xa8] sm:$0xff]  ;;  %v77_v46 = vld [vmem:[%s464_s1 + $0x1a0] sm:$0xff] }
  0x11   :  { %125 = vmatpush.msra.mxu1 %v50_v27  ;;  %166 = vmatpush.msra.mxu3 %v81_v29  ;;  %v29_v47 = vld [vmem:[%s464_s1 + $0x20] sm:$0xff] }
  0x12   :  { %106 = vmatpush.msra.mxu0 %v33_v30  ;;  %147 = vmatpush.msra.mxu2 %v64_v32  ;;  %v45_v48 = vld [vmem:[%s464_s1 + $0xa0] sm:$0xff] }
  0x13   :  { %126 = vmatpush.msra.mxu1 %v49_v31  ;;  %167 = vmatpush.msra.mxu3 %v80_v33 }
  0x14   :  { %107 = vmatpush.msra.mxu0 %v32_v34  ;;  %148 = vmatpush.msra.mxu2 %v63_v36 }
  0x15   :  { %127 = vmatpush.msra.mxu1 %v48_v35  ;;  %168 = vmatpush.msra.mxu3 %v79_v37 }
  0x16   :  { %108 = vmatpush.msra.mxu0 %v31_v38  ;;  %149 = vmatpush.msra.mxu2 %v62_v40 }
  0x17   :  { %128 = vmatpush.msra.mxu1 %v47_v39  ;;  %169 = vmatpush.msra.mxu3 %v78_v41 }
  0x18   :  { %8 = vsyncpa [#allocation4], 0  ;;  %109 = vmatpush.msra.mxu0 %v30_v42  ;;  %v60_v49 = vld [vmem:[%s464_s1 + $0x118] sm:$0xff]  ;;  %150 = vmatpush.msra.mxu2 %v61_v45  ;;  %v59_v53 = vld [vmem:[%s464_s1 + $0x110] sm:$0xff]  ;;  %vm19_vm0 = vcmask 9216   ;;  %v237_v5 = vmov 0.0  }
  0x19   :  { %129 = vmatpush.msra.mxu1 %v46_v43  ;;  %v76_v50 = vld [vmem:[%s464_s1 + $0x198] sm:$0xff]  ;;  %170 = vmatpush.msra.mxu3 %v77_v46  ;;  %v75_v54 = vld [vmem:[%s464_s1 + $0x190] sm:$0xff]  ;;  %v58_v57 = vld [vmem:[%s464_s1 + $0x108] sm:$0xff]  ;;  %20 = vst.msk [vmem:[#allocation2] sm:$0x3] %vm19_vm0, %v237_v5  ;;  %s238_s6 = smov [#allocation3]  }
  0x1a   :  { %v28_v51 = vld [vmem:[%s464_s1 + $0x18] sm:$0xff]  ;;  %110 = vmatpush.msra.mxu0 %v29_v47  ;;  %151 = vmatpush.msra.mxu2 %v60_v49  ;;  %v27_v55 = vld [vmem:[%s464_s1 + $0x10] sm:$0xff]  ;;  %v74_v58 = vld [vmem:[%s464_s1 + $0x188] sm:$0xff]  ;;  %s197_s7 = sshll.u32 %s238_s6, 4  ;;  %s199_s10 = sshll.u32 %s466_s3, 4  ;;  %s198_s7 = int_to_ptr.vmem [resolvable:$true] %s197_s7  ;;  %s200_s10 = int_to_ptr.hbm [resolvable:$true] %s199_s10 }
  0x1b   :  { %v44_v52 = vld [vmem:[%s464_s1 + $0x98] sm:$0xff]  ;;  %130 = vmatpush.msra.mxu1 %v45_v48  ;;  %171 = vmatpush.msra.mxu3 %v76_v50  ;;  %v43_v56 = vld [vmem:[%s464_s1 + $0x90] sm:$0xff]  ;;  %v26_v59 = vld [vmem:[%s464_s1 + $0x8] sm:$0xff] }
  0x1c   :  { %111 = vmatpush.msra.mxu0 %v28_v51  ;;  %152 = vmatpush.msra.mxu2 %v59_v53  ;;  %v42_v60 = vld [vmem:[%s464_s1 + $0x88] sm:$0xff]  ;;  %v57_v61 = vld [vmem:[%s464_s1 + $0x100] sm:$0xff]  ;;  %v93_v63 = vld.sshfl [vmem:[#allocation1 + $0x10] sm:$0xff pattern:$0x73625140] }
  0x1d   :  { %131 = vmatpush.msra.mxu1 %v44_v52  ;;  %172 = vmatpush.msra.mxu3 %v75_v54  ;;  %v73_v62 = vld [vmem:[%s464_s1 + $0x180] sm:$0xff]  ;;  %v94_v0 = vld.sshfl [vmem:[#allocation1 + $0x18] sm:$0xff pattern:$0x73625140] }
  0x1e   :  { %112 = vmatpush.msra.mxu0 %v27_v55  ;;  %153 = vmatpush.msra.mxu2 %v58_v57  ;;  %v25_v1 = vld [vmem:[%s464_s1] sm:$0xff]  ;;  %v92_v4 = vld.sshfl [vmem:[#allocation1 + $0x8] sm:$0xff pattern:$0x73625140] }
  0x1f   :  { %132 = vmatpush.msra.mxu1 %v43_v56  ;;  %173 = vmatpush.msra.mxu3 %v74_v58  ;;  %v41_v2 = vld [vmem:[%s464_s1 + $0x80] sm:$0xff] }
  0x20   :  { %113 = vmatpush.msra.mxu0 %v26_v59  ;;  %154 = vmatpush.msra.mxu2 %v57_v61  ;;  %v91_v3 = vld.sshfl [vmem:[#allocation1] sm:$0xff pattern:$0x73625140]  ;;  %v22_v12 = vld [vmem:[#allocation2] sm:$0x3] }
  0x21   :  { %133 = vmatpush.msra.mxu1 %v42_v60  ;;  %174 = vmatpush.msra.mxu3 %v73_v62  ;;  %v210_v15 = vld [vmem:[%s465_s2] ss:$0 sm:$0xff] }
  0x22   :  { %155 = vmatmul.f32.vlgmr.msra.gmra.mxu2 %v93_v63  ;;  %175 = vmatmul.f32.vlgmr.msra.gmra.mxu3 %v94_v0 }
  0x23   :  { %114 = vmatpush.msra.mxu0 %v25_v1  ;;  %134 = vmatpush.msra.mxu1 %v41_v2 }
  0x24   :  { %115 = vmatmul.f32.vlgmr.msra.gmra.mxu0 %v91_v3  ;;  %135 = vmatmul.f32.vlgmr.msra.gmra.mxu1 %v92_v4 }
  0xa1   :  { %v116_v6 = vpop.f32.mrf.mxu0  ;;  %v136_v7 = vpop.f32.mrf.mxu1 }
  0xa2   :  { %v137_v8 = vadd.f32 %v136_v7, %v116_v6 }
  0xa5   :  { %v156_v9 = vpop.f32.mrf.mxu2  ;;  %v176_v10 = vpop.f32.mrf.mxu3 }
  0xa6   :  { %v157_v11 = vadd.f32 %v156_v9, %v137_v8 }
  0xa8   :  { %v177_v13 = vadd.f32 %v176_v10, %v157_v11 }
  0xaa   :  { %v179_v14 = vadd.f32 %v177_v13, %v22_v12 }
  0xac   :  { %181 = vst.msk [vmem:[#allocation2] sm:$0x3] %vm19_vm0, %v179_v14 }
  0xb3   :  { %v185_v16 = vld [vmem:[#allocation2] sm:$0x3] }
  0xb4   :  { %v190_v17 = vadd.f32 %v210_v15, %v185_v16 }
  0xb6   :  { %191 = vst.msk [vmem:[#allocation3] sm:$0x3] %vm19_vm0, %v190_v17 }
  0xb7   :  { %202 = dma.vmem_to_hbm [thread:$0]  %s198_s7, 32, %s200_s10, [#allocation4]  }
  0xb8   :  { %235 = dma.done.wait [#allocation4], 32  }
  0xb9   :  { %236 = vsyncadd [#allocation4], 4294967264 }
  0xba   :  { %207 = vsyncpa [#allocation4], 1 }

</bundles_post_ra>
